<compile_context>
chip_gen: v5e
topology: v5e:2x2
jax: 0.10.0
libtpu: 0.0.40
codegen_flags: <defaults>
</compile_context>

<pallas_src>
import functools

import jax
import jax.numpy as jnp
from jax.experimental import pallas as pl
from jax.experimental.pallas import tpu as pltpu

K = 5          # conv kernel size
EPS = 1e-5     # BatchNorm2d default eps


def _round_up(x, m):
    return (x + m - 1) // m * m


# ----------------------------------------------------------------------------
# Fused kernel: polyphase 5x5 conv (one im2col matmul for ALL images)
#               + training-mode BatchNorm (masked batch stats) + ReLU
# ----------------------------------------------------------------------------
def _fused_kernel(x_ref, w_ref, mask_ref, gamma_ref, beta_ref, g_ref, o_ref,
                  *, n_img, cin_p, wxp, lout_p, inv_count):
    # x_ref    : (N*Cin_p, Lf)       bf16  flattened zero-padded input images
    # w_ref    : (4*Cout, 9*Cin_p)   bf16  polyphase weight matrix
    # mask_ref : (4*Cout, N*Lout_p)  f32   1.0 on valid output lanes, 0.0 on junk
    # gamma_ref/beta_ref : (4*Cout,1) f32  per-row BN affine (row = co*4 + phase)
    # g_ref    : (4*Cout, 4*Cout)    f32   channel-group matrix (r//4 == s//4)
    # o_ref    : (4*Cout, N*Lout_p)  f32   BN+ReLU'd conv output, phase-major
    x = x_ref[...]                                           # single bf16 load
    cols = []
    for n in range(n_img):                                   # fold images on lanes
        r0 = n * cin_p
        chunks = []
        for a in range(3):                                   # 3x3 window over the
            for b in range(3):                               # original-res grid
                s = a * wxp + b                              # static lane offset
                chunks.append(x[r0:r0 + cin_p, s:s + lout_p])
        cols.append(jnp.concatenate(chunks, axis=0))         # (9*Cin_p, Lout_p)
    patch = jnp.concatenate(cols, axis=1)                    # (9*Cin_p, N*Lout_p)

    # one MXU matmul, K = 9*Cin_p, f32 accumulation (bf16 inputs).
    y = jnp.dot(w_ref[...], patch, preferred_element_type=jnp.float32)

    # --- BatchNorm batch statistics over valid output pixels -----------------
    # Lane-reduce first (XLU), then a tiny channel-group matmul broadcasts the
    # per-channel sums back to every (channel, phase) row.
    mask = mask_ref[...]
    ym = y * mask
    s1 = jnp.sum(ym, axis=1, keepdims=True)                  # (4*Cout, 1) sum y
    s2 = jnp.sum(ym * y, axis=1, keepdims=True)              # (4*Cout, 1) sum y^2
    c1 = jnp.dot(g_ref[...], s1, preferred_element_type=jnp.float32)
    c2 = jnp.dot(g_ref[...], s2, preferred_element_type=jnp.float32)
    mean = c1 * inv_count
    var = jnp.maximum(c2 * inv_count - mean * mean, 0.0)     # clamp cancellation
    inv = jax.lax.rsqrt(var + EPS)
    scale = gamma_ref[...] * inv
    shift = beta_ref[...] - mean * scale
    o_ref[...] = jnp.maximum(y * scale + shift, 0.0)


# ----------------------------------------------------------------------------
# Forward pass
# ----------------------------------------------------------------------------
def simple_gudi_upconv_block(x_nchw, conv_w_oihw, bn_gamma, bn_beta,
                             oheight=0, owidth=0):
    N, Cin, H, W = x_nchw.shape
    Cout = conv_w_oihw.shape[0]
    crop = (oheight != 0 and owidth != 0)
    Hu = oheight if crop else 2 * H
    Wu = owidth if crop else 2 * W
    Hx, Wx = -(-Hu // 2), -(-Wu // 2)       # ceil: rows/cols of x actually used
    Wxp = Wx + 2                            # +1 halo column each side
    Lout = Hx * Wxp                         # flat output pixels (2 junk cols/row)
    Lout_p = _round_up(Lout, 128)           # lane-dense, unmasked stores
    Cin_p = _round_up(Cin, 16)              # bf16 sublane-tile alignment

    # ---- XLA prep: crop used rows/cols, halo pad, channel pad, bf16, flatten
    xc = x_nchw[:, :, :Hx, :Wx]
    xp_ = jnp.pad(xc, ((0, 0), (0, Cin_p - Cin), (1, 2), (1, 1)))
    Lf_nat = (Hx + 3) * Wxp
    Lf = max(Lf_nat, 2 * Wxp + 2 + Lout_p)  # in-kernel slices stay in bounds
    xflat = xp_.reshape(N, Cin_p, Lf_nat)
    if Lf > Lf_nat:
        xflat = jnp.pad(xflat, ((0, 0), (0, 0), (0, Lf - Lf_nat)))
    xflat = xflat.reshape(N * Cin_p, Lf).astype(jnp.bfloat16)

    # ---- polyphase weight matrix (4*Cout, 9*Cin_p), one-shot construction ---
    # wmat[co*4+pr*2+pc, (a*3+b)*Cin_p+ci] = w[co,ci,2a-pr,2b-pc] (0 if invalid)
    wp = jnp.pad(conv_w_oihw.astype(jnp.float32),
                 ((0, 0), (0, 0), (1, 0), (1, 0)))            # (Cout,Cin,6,6)
    w6 = wp.reshape(Cout, Cin, 3, 2, 3, 2)                    # kh=2a+v, kw=2b+t
    w6 = jnp.transpose(w6, (0, 3, 5, 2, 4, 1))[:, ::-1, ::-1]  # (Cout,2,2,3,3,Cin)
    w6 = jnp.pad(w6, ((0, 0),) * 5 + ((0, Cin_p - Cin),))
    wmat = w6.reshape(4 * Cout, 9 * Cin_p).astype(jnp.bfloat16)

    # ---- validity mask: kills halo-wrap columns, Lout->Lout_p pad lanes, and
    # ---- (for odd crops) the out-of-range phase rows/cols -------------------
    f = jnp.arange(Lout_p)
    qi, qj = f // Wxp, f % Wxp
    pr = jnp.array([0, 0, 1, 1])
    pc = jnp.array([0, 1, 0, 1])
    m4 = ((f < Lout) & (qj < Wx))[None, :]
    m4 = m4 & (2 * qi[None, :] + pr[:, None] < Hu) \
            & (2 * qj[None, :] + pc[:, None] < Wu)            # (4, Lout_p)
    mask = jnp.tile(m4.astype(jnp.float32), (Cout, N))        # (4*Cout, N*Lout_p)

    gamma_r = jnp.repeat(bn_gamma.astype(jnp.float32), 4)[:, None]
    beta_r = jnp.repeat(bn_beta.astype(jnp.float32), 4)[:, None]
    rows = jnp.arange(4 * Cout)
    gmat = (rows[:, None] // 4 == rows[None, :] // 4).astype(jnp.float32)

    kernel = functools.partial(
        _fused_kernel, n_img=N, cin_p=Cin_p, wxp=Wxp, lout_p=Lout_p,
        inv_count=1.0 / float(N * Hu * Wu))

    # TODO(synk): at production N/H/W, tile a parallel grid (images / output-row
    # tiles) for both v7x TensorCores, set vmem_limit_bytes explicitly, and turn
    # the BN statistics into a cross-step accumulation + finalize pass.
    out = pl.pallas_call(
        kernel,
        out_shape=jax.ShapeDtypeStruct((4 * Cout, N * Lout_p), jnp.float32),
        grid=(1,),
        in_specs=[
            pl.BlockSpec((N * Cin_p, Lf), lambda i: (0, 0)),
            pl.BlockSpec((4 * Cout, 9 * Cin_p), lambda i: (0, 0)),
            pl.BlockSpec((4 * Cout, N * Lout_p), lambda i: (0, 0)),
            pl.BlockSpec((4 * Cout, 1), lambda i: (0, 0)),
            pl.BlockSpec((4 * Cout, 1), lambda i: (0, 0)),
            pl.BlockSpec((4 * Cout, 4 * Cout), lambda i: (0, 0)),
        ],
        out_specs=pl.BlockSpec((4 * Cout, N * Lout_p), lambda i: (0, 0)),
        compiler_params=pltpu.CompilerParams(
            dimension_semantics=("arbitrary",)),
    )(xflat, wmat, mask, gamma_r, beta_r, gmat)

    # ---- phase de-interleave + crop: one small transpose in XLA glue --------
    y = out.reshape(Cout, 2, 2, N, Lout_p)[..., :Lout]        # drop lane pad
    y = y.reshape(Cout, 2, 2, N, Hx, Wxp)[..., :Wx]           # drop junk cols
    y = jnp.transpose(y, (3, 0, 4, 1, 5, 2)).reshape(N, Cout, 2 * Hx, 2 * Wx)
    return y[:, :, :Hu, :Wu]


# ----------------------------------------------------------------------------
# Pure-JAX reference (correctness check)
# ----------------------------------------------------------------------------
def unpool_zeros(x_nchw, stride=2):
    n, c, h, w = x_nchw.shape
    up = jnp.zeros((n, c, h * stride, w * stride), x_nchw.dtype)
    return up.at[:, :, ::stride, ::stride].set(x_nchw)


def reference_forward(x_nchw, conv_w_oihw, bn_gamma, bn_beta, oheight, owidth):
    up = unpool_zeros(x_nchw, 2)
    if oheight != 0 and owidth != 0:
        up = up[:, :, :oheight, :owidth]
    y = jax.lax.conv_general_dilated(
        up, conv_w_oihw, window_strides=(1, 1),
        padding=((2, 2), (2, 2)),
        dimension_numbers=('NCHW', 'OIHW', 'NCHW'),
        precision=jax.lax.Precision.HIGHEST)
    mean = jnp.mean(y, axis=(0, 2, 3), keepdims=True)
    var = jnp.mean(jnp.square(y - mean), axis=(0, 2, 3), keepdims=True)
    yhat = (y - mean) * jax.lax.rsqrt(var + EPS)
    out = yhat * bn_gamma[None, :, None, None] + bn_beta[None, :, None, None]
    return jnp.maximum(out, 0.0)


# ----------------------------------------------------------------------------
if __name__ == "__main__":
    key = jax.random.PRNGKey(0)
    kx, kw = jax.random.split(key)

    N, CIN, H, W = 2, 4, 16, 16
    COUT = 8
    OHEIGHT, OWIDTH = 30, 28     # exercises the narrow() crop path

    x = jax.random.normal(kx, (N, CIN, H, W), jnp.float32)
    conv_w = jax.random.normal(kw, (COUT, CIN, K, K), jnp.float32) * 0.05
    bn_gamma = jnp.ones((COUT,), jnp.float32)    # torch BatchNorm2d default init
    bn_beta = jnp.zeros((COUT,), jnp.float32)

    fwd = jax.jit(simple_gudi_upconv_block, static_argnums=(4, 5))
    out = jax.block_until_ready(fwd(x, conv_w, bn_gamma, bn_beta,
                                    OHEIGHT, OWIDTH))

    ref = reference_forward(x, conv_w, bn_gamma, bn_beta, OHEIGHT, OWIDTH)
    assert out.shape == ref.shape == (N, COUT, OHEIGHT, OWIDTH), out.shape
    max_err = float(jnp.max(jnp.abs(out - ref)))
    # tolerance accounts for the bf16 MXU inputs (f32 accumulation); downstream
    # consumers expecting f32-conv parity should note this quantization.
    if not bool(jnp.allclose(out, ref, rtol=2e-2, atol=2e-2)):
        raise AssertionError(f"Pallas output mismatch, max abs err = {max_err}")

    print("KERNEL_OK")
</pallas_src>

<mosaic_0001>
module attributes {stable_mosaic.version = 11 : i64} {
  func.func @_fused_kernel(%arg0: i32, %arg1: memref<32x290xbf16, #tpu.memory_space<vmem>>, %arg2: memref<32x144xbf16, #tpu.memory_space<vmem>>, %arg3: memref<32x512xf32, #tpu.memory_space<vmem>>, %arg4: memref<32x1xf32, #tpu.memory_space<vmem>>, %arg5: memref<32x1xf32, #tpu.memory_space<vmem>>, %arg6: memref<32x32xf32, #tpu.memory_space<vmem>>, %arg7: memref<32x512xf32, #tpu.memory_space<vmem>>) attributes {dimension_semantics = [#tpu.dimension_semantics<arbitrary>], iteration_bounds = array<i64: 1>, scalar_prefetch = 0 : i64, scratch_operands = 0 : i64, tpu.core_type = #tpu.core_type<tc>, window_params = [{pipeline_mode = #tpu.pipeline_mode<synchronous>, transform_indices = @transform_0, window_bounds = array<i64: 32, 290>}, {pipeline_mode = #tpu.pipeline_mode<synchronous>, transform_indices = @transform_1, window_bounds = array<i64: 32, 144>}, {pipeline_mode = #tpu.pipeline_mode<synchronous>, transform_indices = @transform_2, window_bounds = array<i64: 32, 512>}, {pipeline_mode = #tpu.pipeline_mode<synchronous>, transform_indices = @transform_3, window_bounds = array<i64: 32, 1>}, {pipeline_mode = #tpu.pipeline_mode<synchronous>, transform_indices = @transform_4, window_bounds = array<i64: 32, 1>}, {pipeline_mode = #tpu.pipeline_mode<synchronous>, transform_indices = @transform_5, window_bounds = array<i64: 32, 32>}, {pipeline_mode = #tpu.pipeline_mode<synchronous>, transform_indices = @transform_6, window_bounds = array<i64: 32, 512>}]} {
    %c0 = arith.constant 0 : index
    %c0_0 = arith.constant 0 : index
    %0 = vector.load %arg1[%c0, %c0_0] : memref<32x290xbf16, #tpu.memory_space<vmem>>, vector<32x290xbf16>
    %1 = vector.extract_strided_slice %0 {offsets = [0, 0], sizes = [16, 256], strides = [1, 1]} : vector<32x290xbf16> to vector<16x256xbf16>
    %2 = vector.extract_strided_slice %0 {offsets = [0, 1], sizes = [16, 256], strides = [1, 1]} : vector<32x290xbf16> to vector<16x256xbf16>
    %3 = vector.extract_strided_slice %0 {offsets = [0, 2], sizes = [16, 256], strides = [1, 1]} : vector<32x290xbf16> to vector<16x256xbf16>
    %4 = vector.extract_strided_slice %0 {offsets = [0, 16], sizes = [16, 256], strides = [1, 1]} : vector<32x290xbf16> to vector<16x256xbf16>
    %5 = vector.extract_strided_slice %0 {offsets = [0, 17], sizes = [16, 256], strides = [1, 1]} : vector<32x290xbf16> to vector<16x256xbf16>
    %6 = vector.extract_strided_slice %0 {offsets = [0, 18], sizes = [16, 256], strides = [1, 1]} : vector<32x290xbf16> to vector<16x256xbf16>
    %7 = vector.extract_strided_slice %0 {offsets = [0, 32], sizes = [16, 256], strides = [1, 1]} : vector<32x290xbf16> to vector<16x256xbf16>
    %8 = vector.extract_strided_slice %0 {offsets = [0, 33], sizes = [16, 256], strides = [1, 1]} : vector<32x290xbf16> to vector<16x256xbf16>
    %9 = vector.extract_strided_slice %0 {offsets = [0, 34], sizes = [16, 256], strides = [1, 1]} : vector<32x290xbf16> to vector<16x256xbf16>
    %10 = tpu.concatenate %1, %2, %3, %4, %5, %6, %7, %8, %9 in 0 : vector<16x256xbf16>, vector<16x256xbf16>, vector<16x256xbf16>, vector<16x256xbf16>, vector<16x256xbf16>, vector<16x256xbf16>, vector<16x256xbf16>, vector<16x256xbf16>, vector<16x256xbf16> -> vector<144x256xbf16>
    %11 = vector.extract_strided_slice %0 {offsets = [16, 0], sizes = [16, 256], strides = [1, 1]} : vector<32x290xbf16> to vector<16x256xbf16>
    %12 = vector.extract_strided_slice %0 {offsets = [16, 1], sizes = [16, 256], strides = [1, 1]} : vector<32x290xbf16> to vector<16x256xbf16>
    %13 = vector.extract_strided_slice %0 {offsets = [16, 2], sizes = [16, 256], strides = [1, 1]} : vector<32x290xbf16> to vector<16x256xbf16>
    %14 = vector.extract_strided_slice %0 {offsets = [16, 16], sizes = [16, 256], strides = [1, 1]} : vector<32x290xbf16> to vector<16x256xbf16>
    %15 = vector.extract_strided_slice %0 {offsets = [16, 17], sizes = [16, 256], strides = [1, 1]} : vector<32x290xbf16> to vector<16x256xbf16>
    %16 = vector.extract_strided_slice %0 {offsets = [16, 18], sizes = [16, 256], strides = [1, 1]} : vector<32x290xbf16> to vector<16x256xbf16>
    %17 = vector.extract_strided_slice %0 {offsets = [16, 32], sizes = [16, 256], strides = [1, 1]} : vector<32x290xbf16> to vector<16x256xbf16>
    %18 = vector.extract_strided_slice %0 {offsets = [16, 33], sizes = [16, 256], strides = [1, 1]} : vector<32x290xbf16> to vector<16x256xbf16>
    %19 = vector.extract_strided_slice %0 {offsets = [16, 34], sizes = [16, 256], strides = [1, 1]} : vector<32x290xbf16> to vector<16x256xbf16>
    %20 = tpu.concatenate %11, %12, %13, %14, %15, %16, %17, %18, %19 in 0 : vector<16x256xbf16>, vector<16x256xbf16>, vector<16x256xbf16>, vector<16x256xbf16>, vector<16x256xbf16>, vector<16x256xbf16>, vector<16x256xbf16>, vector<16x256xbf16>, vector<16x256xbf16> -> vector<144x256xbf16>
    %21 = tpu.concatenate %10, %20 in 1 : vector<144x256xbf16>, vector<144x256xbf16> -> vector<144x512xbf16>
    %c0_1 = arith.constant 0 : index
    %c0_2 = arith.constant 0 : index
    %22 = vector.load %arg2[%c0_1, %c0_2] : memref<32x144xbf16, #tpu.memory_space<vmem>>, vector<32x144xbf16>
    %cst = arith.constant dense<0.000000e+00> : vector<32x512xf32>
    %23 = tpu.matmul %22, %21, %cst {dimension_numbers = #tpu.dot_dimension_numbers<[1], [0], [0], [1], [0, 0, 1, 1], [], []>} : vector<32x144xbf16>, vector<144x512xbf16>, vector<32x512xf32> -> vector<32x512xf32>
    %c0_3 = arith.constant 0 : index
    %c0_4 = arith.constant 0 : index
    %24 = vector.load %arg3[%c0_3, %c0_4] : memref<32x512xf32, #tpu.memory_space<vmem>>, vector<32x512xf32>
    %25 = arith.mulf %23, %24 : vector<32x512xf32>
    %cst_5 = arith.constant dense<0.000000e+00> : vector<32xf32>
    %26 = vector.multi_reduction <add>, %25, %cst_5 [1] : vector<32x512xf32> to vector<32xf32>
    %27 = vector.shape_cast %26 : vector<32xf32> to vector<32x1xf32>
    %28 = arith.mulf %25, %23 : vector<32x512xf32>
    %cst_6 = arith.constant dense<0.000000e+00> : vector<32xf32>
    %29 = vector.multi_reduction <add>, %28, %cst_6 [1] : vector<32x512xf32> to vector<32xf32>
    %30 = vector.shape_cast %29 : vector<32xf32> to vector<32x1xf32>
    %c0_7 = arith.constant 0 : index
    %c0_8 = arith.constant 0 : index
    %31 = vector.load %arg6[%c0_7, %c0_8] : memref<32x32xf32, #tpu.memory_space<vmem>>, vector<32x32xf32>
    %cst_9 = arith.constant dense<0.000000e+00> : vector<32x1xf32>
    %32 = tpu.matmul %31, %27, %cst_9 {dimension_numbers = #tpu.dot_dimension_numbers<[1], [0], [0], [1], [0, 0, 1, 1], [], []>} : vector<32x32xf32>, vector<32x1xf32>, vector<32x1xf32> -> vector<32x1xf32>
    %c0_10 = arith.constant 0 : index
    %c0_11 = arith.constant 0 : index
    %33 = vector.load %arg6[%c0_10, %c0_11] : memref<32x32xf32, #tpu.memory_space<vmem>>, vector<32x32xf32>
    %cst_12 = arith.constant dense<0.000000e+00> : vector<32x1xf32>
    %34 = tpu.matmul %33, %30, %cst_12 {dimension_numbers = #tpu.dot_dimension_numbers<[1], [0], [0], [1], [0, 0, 1, 1], [], []>} : vector<32x32xf32>, vector<32x1xf32>, vector<32x1xf32> -> vector<32x1xf32>
    %cst_13 = arith.constant 5.95238118E-4 : f32
    %35 = vector.broadcast %cst_13 : f32 to vector<32x1xf32>
    %36 = arith.mulf %32, %35 : vector<32x1xf32>
    %cst_14 = arith.constant 5.95238118E-4 : f32
    %37 = vector.broadcast %cst_14 : f32 to vector<32x1xf32>
    %38 = arith.mulf %34, %37 : vector<32x1xf32>
    %39 = arith.mulf %36, %36 : vector<32x1xf32>
    %40 = arith.subf %38, %39 : vector<32x1xf32>
    %cst_15 = arith.constant 0.000000e+00 : f32
    %41 = vector.broadcast %cst_15 : f32 to vector<32x1xf32>
    %42 = arith.maximumf %40, %41 : vector<32x1xf32>
    %cst_16 = arith.constant 9.99999974E-6 : f32
    %43 = vector.broadcast %cst_16 : f32 to vector<32x1xf32>
    %44 = arith.addf %42, %43 : vector<32x1xf32>
    %45 = math.rsqrt %44 : vector<32x1xf32>
    %c0_17 = arith.constant 0 : index
    %c0_18 = arith.constant 0 : index
    %46 = vector.load %arg4[%c0_17, %c0_18] : memref<32x1xf32, #tpu.memory_space<vmem>>, vector<32x1xf32>
    %47 = arith.mulf %46, %45 : vector<32x1xf32>
    %c0_19 = arith.constant 0 : index
    %c0_20 = arith.constant 0 : index
    %48 = vector.load %arg5[%c0_19, %c0_20] : memref<32x1xf32, #tpu.memory_space<vmem>>, vector<32x1xf32>
    %49 = arith.mulf %36, %47 : vector<32x1xf32>
    %50 = arith.subf %48, %49 : vector<32x1xf32>
    %51 = vector.broadcast %47 : vector<32x1xf32> to vector<32x512xf32>
    %52 = arith.mulf %23, %51 : vector<32x512xf32>
    %53 = vector.broadcast %50 : vector<32x1xf32> to vector<32x512xf32>
    %54 = arith.addf %52, %53 : vector<32x512xf32>
    %cst_21 = arith.constant 0.000000e+00 : f32
    %55 = vector.broadcast %cst_21 : f32 to vector<32x512xf32>
    %56 = arith.maximumf %54, %55 : vector<32x512xf32>
    %c0_22 = arith.constant 0 : index
    %c0_23 = arith.constant 0 : index
    %57 = vector.load %arg7[%c0_22, %c0_23] : memref<32x512xf32, #tpu.memory_space<vmem>>, vector<32x512xf32>
    tpu.vector_store %arg7[%c0_22, %c0_23], %56 {strides = array<i32>} : memref<32x512xf32, #tpu.memory_space<vmem>>, vector<32x512xf32>,
    return
  }
  func.func @transform_0(%arg0: i32) -> (i32, i32) {
    %c0_i32 = arith.constant 0 : i32
    %c0_i32_0 = arith.constant 0 : i32
    %c0_i32_1 = arith.constant 0 : i32
    return %c0_i32, %c0_i32_0 : i32, i32
  }
  func.func @transform_1(%arg0: i32) -> (i32, i32) {
    %c0_i32 = arith.constant 0 : i32
    %c0_i32_0 = arith.constant 0 : i32
    %c0_i32_1 = arith.constant 0 : i32
    return %c0_i32, %c0_i32_0 : i32, i32
  }
  func.func @transform_2(%arg0: i32) -> (i32, i32) {
    %c0_i32 = arith.constant 0 : i32
    %c0_i32_0 = arith.constant 0 : i32
    %c0_i32_1 = arith.constant 0 : i32
    return %c0_i32, %c0_i32_0 : i32, i32
  }
  func.func @transform_3(%arg0: i32) -> (i32, i32) {
    %c0_i32 = arith.constant 0 : i32
    %c0_i32_0 = arith.constant 0 : i32
    %c0_i32_1 = arith.constant 0 : i32
    return %c0_i32, %c0_i32_0 : i32, i32
  }
  func.func @transform_4(%arg0: i32) -> (i32, i32) {
    %c0_i32 = arith.constant 0 : i32
    %c0_i32_0 = arith.constant 0 : i32
    %c0_i32_1 = arith.constant 0 : i32
    return %c0_i32, %c0_i32_0 : i32, i32
  }
  func.func @transform_5(%arg0: i32) -> (i32, i32) {
    %c0_i32 = arith.constant 0 : i32
    %c0_i32_0 = arith.constant 0 : i32
    %c0_i32_1 = arith.constant 0 : i32
    return %c0_i32, %c0_i32_0 : i32, i32
  }
  func.func @transform_6(%arg0: i32) -> (i32, i32) {
    %c0_i32 = arith.constant 0 : i32
    %c0_i32_0 = arith.constant 0 : i32
    %c0_i32_1 = arith.constant 0 : i32
    return %c0_i32, %c0_i32_0 : i32, i32
  }
}

</mosaic_0001>

<bundles_post_ra>
// kernel: tile.8
= control target key start
LH: loop header
LB: loop body
LE: loop exit
PB: predicated region body
PF: predicated region fallthrough
CT: control target
= control target key end

     0   :  { %s448_s0 = inlined_call_operand.vmem [shape: f32[4,256], index: 0, kind: input, shape index: {}]   ;;  %s449_s1 = inlined_call_operand.vmem [shape: f32[8,4,2,256], index: 1, kind: output, shape index: {}]  }
   0x1   :  { %v4_v0 = vld [vmem:[%s448_s0] ss:$0 sm:$0xff]  ;;  %v159_v1 = vld [vmem:[%s448_s0 + $0x1] ss:$0 sm:$0xff]  ;;  %v168_v2 = vld [vmem:[%s448_s0 + $0x2] ss:$0 sm:$0xff] }
   0x2   :  { %5 = vst [vmem:[%s449_s1] sm:$0x3] %v4_v0  ;;  %v177_v3 = vld [vmem:[%s448_s0 + $0x3] ss:$0 sm:$0xff]  ;;  %v186_v4 = vld [vmem:[%s448_s0 + $0x4] ss:$0 sm:$0xff] }
   0x3   :  { %152 = vst [vmem:[%s449_s1 + $0x10] sm:$0x3] %v4_v0  ;;  %v195_v5 = vld [vmem:[%s448_s0 + $0x5] ss:$0 sm:$0xff]  ;;  %v204_v6 = vld [vmem:[%s448_s0 + $0x6] ss:$0 sm:$0xff] }
   0x4   :  { %153 = vst [vmem:[%s449_s1 + $0x20] sm:$0x3] %v4_v0  ;;  %v213_v7 = vld [vmem:[%s448_s0 + $0x7] ss:$0 sm:$0xff] }
   0x5   :  { %154 = vst [vmem:[%s449_s1 + $0x30] sm:$0x3] %v4_v0 }
   0x6   :  { %155 = vst [vmem:[%s449_s1 + $0x40] sm:$0x3] %v4_v0 }
   0x7   :  { %156 = vst [vmem:[%s449_s1 + $0x50] sm:$0x3] %v4_v0 }
   0x8   :  { %157 = vst [vmem:[%s449_s1 + $0x60] sm:$0x3] %v4_v0 }
   0x9   :  { %158 = vst [vmem:[%s449_s1 + $0x70] sm:$0x3] %v4_v0 }
   0xa   :  { %160 = vst [vmem:[%s449_s1 + $0x4] sm:$0x3] %v159_v1 }
   0xb   :  { %161 = vst [vmem:[%s449_s1 + $0x14] sm:$0x3] %v159_v1 }
   0xc   :  { %162 = vst [vmem:[%s449_s1 + $0x24] sm:$0x3] %v159_v1 }
   0xd   :  { %163 = vst [vmem:[%s449_s1 + $0x34] sm:$0x3] %v159_v1 }
   0xe   :  { %164 = vst [vmem:[%s449_s1 + $0x44] sm:$0x3] %v159_v1 }
   0xf   :  { %165 = vst [vmem:[%s449_s1 + $0x54] sm:$0x3] %v159_v1 }
  0x10   :  { %166 = vst [vmem:[%s449_s1 + $0x64] sm:$0x3] %v159_v1 }
  0x11   :  { %167 = vst [vmem:[%s449_s1 + $0x74] sm:$0x3] %v159_v1 }
  0x12   :  { %169 = vst [vmem:[%s449_s1 + $0x8] sm:$0x3] %v168_v2 }
  0x13   :  { %170 = vst [vmem:[%s449_s1 + $0x18] sm:$0x3] %v168_v2 }
  0x14   :  { %171 = vst [vmem:[%s449_s1 + $0x28] sm:$0x3] %v168_v2 }
  0x15   :  { %172 = vst [vmem:[%s449_s1 + $0x38] sm:$0x3] %v168_v2 }
  0x16   :  { %173 = vst [vmem:[%s449_s1 + $0x48] sm:$0x3] %v168_v2 }
  0x17   :  { %174 = vst [vmem:[%s449_s1 + $0x58] sm:$0x3] %v168_v2 }
  0x18   :  { %175 = vst [vmem:[%s449_s1 + $0x68] sm:$0x3] %v168_v2 }
  0x19   :  { %176 = vst [vmem:[%s449_s1 + $0x78] sm:$0x3] %v168_v2 }
  0x1a   :  { %178 = vst [vmem:[%s449_s1 + $0xc] sm:$0x3] %v177_v3 }
  0x1b   :  { %179 = vst [vmem:[%s449_s1 + $0x1c] sm:$0x3] %v177_v3 }
  0x1c   :  { %180 = vst [vmem:[%s449_s1 + $0x2c] sm:$0x3] %v177_v3 }
  0x1d   :  { %181 = vst [vmem:[%s449_s1 + $0x3c] sm:$0x3] %v177_v3 }
  0x1e   :  { %182 = vst [vmem:[%s449_s1 + $0x4c] sm:$0x3] %v177_v3 }
  0x1f   :  { %183 = vst [vmem:[%s449_s1 + $0x5c] sm:$0x3] %v177_v3 }
  0x20   :  { %184 = vst [vmem:[%s449_s1 + $0x6c] sm:$0x3] %v177_v3 }
  0x21   :  { %185 = vst [vmem:[%s449_s1 + $0x7c] sm:$0x3] %v177_v3 }
  0x22   :  { %187 = vst [vmem:[%s449_s1 + $0x2] sm:$0x3] %v186_v4 }
  0x23   :  { %188 = vst [vmem:[%s449_s1 + $0x12] sm:$0x3] %v186_v4 }
  0x24   :  { %189 = vst [vmem:[%s449_s1 + $0x22] sm:$0x3] %v186_v4 }
  0x25   :  { %190 = vst [vmem:[%s449_s1 + $0x32] sm:$0x3] %v186_v4 }
  0x26   :  { %191 = vst [vmem:[%s449_s1 + $0x42] sm:$0x3] %v186_v4 }
  0x27   :  { %192 = vst [vmem:[%s449_s1 + $0x52] sm:$0x3] %v186_v4 }
  0x28   :  { %193 = vst [vmem:[%s449_s1 + $0x62] sm:$0x3] %v186_v4 }
  0x29   :  { %194 = vst [vmem:[%s449_s1 + $0x72] sm:$0x3] %v186_v4 }
  0x2a   :  { %196 = vst [vmem:[%s449_s1 + $0x6] sm:$0x3] %v195_v5 }
  0x2b   :  { %197 = vst [vmem:[%s449_s1 + $0x16] sm:$0x3] %v195_v5 }
  0x2c   :  { %198 = vst [vmem:[%s449_s1 + $0x26] sm:$0x3] %v195_v5 }
  0x2d   :  { %199 = vst [vmem:[%s449_s1 + $0x36] sm:$0x3] %v195_v5 }
  0x2e   :  { %200 = vst [vmem:[%s449_s1 + $0x46] sm:$0x3] %v195_v5 }
  0x2f   :  { %201 = vst [vmem:[%s449_s1 + $0x56] sm:$0x3] %v195_v5 }
  0x30   :  { %202 = vst [vmem:[%s449_s1 + $0x66] sm:$0x3] %v195_v5 }
  0x31   :  { %203 = vst [vmem:[%s449_s1 + $0x76] sm:$0x3] %v195_v5 }
  0x32   :  { %205 = vst [vmem:[%s449_s1 + $0xa] sm:$0x3] %v204_v6 }
  0x33   :  { %206 = vst [vmem:[%s449_s1 + $0x1a] sm:$0x3] %v204_v6 }
  0x34   :  { %207 = vst [vmem:[%s449_s1 + $0x2a] sm:$0x3] %v204_v6 }
  0x35   :  { %208 = vst [vmem:[%s449_s1 + $0x3a] sm:$0x3] %v204_v6 }
  0x36   :  { %209 = vst [vmem:[%s449_s1 + $0x4a] sm:$0x3] %v204_v6 }
  0x37   :  { %210 = vst [vmem:[%s449_s1 + $0x5a] sm:$0x3] %v204_v6 }
  0x38   :  { %211 = vst [vmem:[%s449_s1 + $0x6a] sm:$0x3] %v204_v6 }
  0x39   :  { %212 = vst [vmem:[%s449_s1 + $0x7a] sm:$0x3] %v204_v6 }
  0x3a   :  { %214 = vst [vmem:[%s449_s1 + $0xe] sm:$0x3] %v213_v7 }
  0x3b   :  { %215 = vst [vmem:[%s449_s1 + $0x1e] sm:$0x3] %v213_v7 }
  0x3c   :  { %216 = vst [vmem:[%s449_s1 + $0x2e] sm:$0x3] %v213_v7 }
  0x3d   :  { %217 = vst [vmem:[%s449_s1 + $0x3e] sm:$0x3] %v213_v7 }
  0x3e   :  { %218 = vst [vmem:[%s449_s1 + $0x4e] sm:$0x3] %v213_v7 }
  0x3f   :  { %219 = vst [vmem:[%s449_s1 + $0x5e] sm:$0x3] %v213_v7 }
  0x40   :  { %220 = vst [vmem:[%s449_s1 + $0x6e] sm:$0x3] %v213_v7 }
  0x41   :  { %221 = vst [vmem:[%s449_s1 + $0x7e] sm:$0x3] %v213_v7 }

// kernel: simple_gudi_upconv_block.1
= control target key start
LH: loop header
LB: loop body
LE: loop exit
PB: predicated region body
PF: predicated region fallthrough
CT: control target
= control target key end

     0   :  { %s852_s29 = smov 96   ;;  %s853_s30 = smov 95   ;;  %vm119_vm0 = vcmask 777216   ;;  %vm108_vm1 = vcmask 785408   ;;  %vm97_vm2 = vcmask 900096   ;;  %vm86_vm3 = vcmask 908288   ;;  %s1365_s0 = inlined_call_operand.vmem [shape: bf16[32,290], index: 0, kind: input, shape index: {}]   ;;  %s1366_s1 = inlined_call_operand.vmem [shape: bf16[32,144], index: 1, kind: input, shape index: {}]   ;;  %s1367_s2 = inlined_call_operand.vmem [shape: f32[32,512], index: 2, kind: input, shape index: {}]   ;;  %s1368_s5 = inlined_call_operand.vmem [shape: f32[32,32], index: 5, kind: input, shape index: {}]   ;;  %s1369_s3 = inlined_call_operand.vmem [shape: f32[32,1], index: 3, kind: input, shape index: {}]   ;;  %s1370_s4 = inlined_call_operand.vmem [shape: f32[32,1], index: 4, kind: input, shape index: {}]   ;;  %s1371_s6 = inlined_call_operand.vmem [shape: f32[32,512], index: 6, kind: output, shape index: {}]  }
   0x1   :  { %v822_v0 = vld [vmem:[%s1365_s0 + $0x4] sm:$0xf]  ;;  %v770_v1 = vld [vmem:[%s1365_s0 + $0xc] sm:$0xf0]  ;;  %v768_v3 = vld [vmem:[%s1365_s0] sm:$0xf] }
   0x2   :  { %v902_v2 = vor.u32 %v822_v0, %v770_v1  ;;  %v823_v4 = vld [vmem:[%s1365_s0 + $0x8] sm:$0xf0]  ;;  %v776_v6 = vld [vmem:[%s1365_s0 + $0x8] sm:$0xf]  ;;  %v824_v7 = vld [vmem:[%s1365_s0 + $0x10] sm:$0xf0] }
   0x3   :  { %v910_v5 = vor.u32 %v823_v4, %v768_v3  ;;  %v777_v8 = vor.u32 %v824_v7, %v776_v6  ;;  %s854_s11 = smov 110   ;;  %s855_s12 = smov 111   ;;  %v825_v9 = vld [vmem:[%s1365_s0 + $0x1c] sm:$0xf]  ;;  %v782_v10 = vld [vmem:[%s1365_s0 + $0x24] sm:$0xf0] }
   0x4   :  { %104 = vrot.lane.b32.xlu1 %v902_v2, %s852_s29  ;;  %115 = vrot.lane.b32.xlu0 %v902_v2, %s853_s30  ;;  %s856_s13 = smov 112   ;;  %s857_s14 = smov 126   ;;  %v780_v11 = vld [vmem:[%s1365_s0 + $0x18] sm:$0xf]  ;;  %v826_v12 = vld [vmem:[%s1365_s0 + $0x20] sm:$0xf0]  ;;  %v976_v15 = vor.u32 %v825_v9, %v782_v10 }
   0x5   :  { %113 = vrot.lane.b32.xlu2 %v910_v5, %s853_s30  ;;  %s858_s15 = smov 127   ;;  %s859_s16 = smov 94   ;;  %v788_v13 = vld [vmem:[%s1365_s0 + $0x20] sm:$0xf]  ;;  %v827_v14 = vld [vmem:[%s1365_s0 + $0x28] sm:$0xf0]  ;;  %v978_v16 = vor.u32 %v826_v12, %v780_v11 }
   0x6   :  { %v789_v17 = vor.u32 %v827_v14, %v788_v13  ;;  %vm75_vm4 = vcmask 916480   ;;  %vm130_vm5 = vcmask 769024   ;;  %vm64_vm6 = vcmask 1031168   ;;  %v828_v50 = vld [vmem:[%s1366_s1 + $0x4] sm:$0xf] }
   0x7   :  { %vm53_vm7 = vcmask 1039360   ;;  %v794_v52 = vld [vmem:[%s1366_s1 + $0x8] sm:$0xf0]  ;;  %v792_v58 = vld [vmem:[%s1366_s1] sm:$0xf]  ;;  %vm252_vm8 = vcmask 130048  }
   0x8   :  { %v1040_v57 = vor.u32 %v828_v50, %v794_v52  ;;  %v829_v59 = vld [vmem:[%s1366_s1 + $0x4] sm:$0xf0]  ;;  %v802_v3 = vld [vmem:[%s1366_s1 + $0x18] sm:$0xf0]  ;;  %v831_v10 = vld [vmem:[%s1366_s1 + $0x14] sm:$0xf0] }
   0x9   :  { %v1050_v60 = vor.u32 %v829_v59, %v792_v58  ;;  %vm503_vm9 = vcmask 261120  }
   0xc   :  { %106 = vrot.lane.b32.xlu1 %v777_v8, %s852_s29  ;;  %117 = vrot.lane.b32.xlu0 %v777_v8, %s853_s30 }
   0xd   :  { %93 = vrot.lane.b32.xlu2 %v902_v2, %s854_s11 }
  0x14   :  { %102 = vrot.lane.b32.xlu1 %v910_v5, %s852_s29  ;;  %95 = vrot.lane.b32.xlu0 %v777_v8, %s854_s11 }
  0x15   :  { %82 = vrot.lane.b32.xlu2 %v902_v2, %s855_s12 }
  0x1c   :  { %91 = vrot.lane.b32.xlu1 %v910_v5, %s854_s11  ;;  %84 = vrot.lane.b32.xlu0 %v777_v8, %s855_s12 }
  0x1d   :  { %71 = vrot.lane.b32.xlu2 %v902_v2, %s856_s13 }
  0x24   :  { %80 = vrot.lane.b32.xlu1 %v910_v5, %s855_s12  ;;  %73 = vrot.lane.b32.xlu0 %v777_v8, %s856_s13 }
  0x25   :  { %60 = vrot.lane.b32.xlu2 %v902_v2, %s857_s14 }
  0x2c   :  { %69 = vrot.lane.b32.xlu1 %v910_v5, %s856_s13  ;;  %62 = vrot.lane.b32.xlu0 %v777_v8, %s857_s14 }
  0x2d   :  { %49 = vrot.lane.b32.xlu2 %v902_v2, %s858_s15 }
  0x34   :  { %58 = vrot.lane.b32.xlu1 %v910_v5, %s857_s14  ;;  %51 = vrot.lane.b32.xlu0 %v777_v8, %s858_s15 }
  0x35   :  { %126 = vrot.lane.b32.xlu2 %v902_v2, %s859_s16 }
  0x3c   :  { %47 = vrot.lane.b32.xlu1 %v910_v5, %s858_s15  ;;  %128 = vrot.lane.b32.xlu0 %v777_v8, %s859_s16 }
  0x3d   :  { %124 = vrot.lane.b32.xlu2 %v910_v5, %s859_s16 }
  0x44   :  { %212 = vrot.lane.b32.xlu1 %v976_v15, %s853_s30  ;;  %210 = vrot.lane.b32.xlu0 %v978_v16, %s853_s30 }
  0x45   :  { %214 = vrot.lane.b32.xlu2 %v789_v17, %s853_s30 }
  0x4c   :  { %202 = vrot.lane.b32.xlu1 %v976_v15, %s852_s29  ;;  %200 = vrot.lane.b32.xlu0 %v978_v16, %s852_s29 }
  0x4d   :  { %204 = vrot.lane.b32.xlu2 %v789_v17, %s852_s29 }
  0x54   :  { %192 = vrot.lane.b32.xlu1 %v976_v15, %s854_s11  ;;  %190 = vrot.lane.b32.xlu0 %v978_v16, %s854_s11 }
  0x55   :  { %194 = vrot.lane.b32.xlu2 %v789_v17, %s854_s11 }
  0x5c   :  { %182 = vrot.lane.b32.xlu1 %v976_v15, %s855_s12  ;;  %180 = vrot.lane.b32.xlu0 %v978_v16, %s855_s12 }
  0x5d   :  { %184 = vrot.lane.b32.xlu2 %v789_v17, %s855_s12 }
  0x5f   :  { %v114_v18 = vpop.permute.xlu2 %113 }
  0x64   :  { %172 = vrot.lane.b32.xlu1 %v976_v15, %s856_s13  ;;  %170 = vrot.lane.b32.xlu0 %v978_v16, %s856_s13 }
  0x65   :  { %174 = vrot.lane.b32.xlu2 %v789_v17, %s856_s13 }
  0x67   :  { %v94_v19 = vpop.permute.xlu2 %93 }
  0x6c   :  { %162 = vrot.lane.b32.xlu1 %v976_v15, %s857_s14  ;;  %160 = vrot.lane.b32.xlu0 %v978_v16, %s857_s14 }
  0x6d   :  { %164 = vrot.lane.b32.xlu2 %v789_v17, %s857_s14 }
  0x6f   :  { %v83_v20 = vpop.permute.xlu2 %82 }
  0x74   :  { %222 = vrot.lane.b32.xlu1 %v976_v15, %s859_s16  ;;  %220 = vrot.lane.b32.xlu0 %v978_v16, %s859_s16 }
  0x75   :  { %150 = vrot.lane.b32.xlu2 %v978_v16, %s858_s15 }
  0x76   :  { %v105_v21 = vpop.permute.xlu1 %104  ;;  %v116_v22 = vpop.permute.xlu0 %115 }
  0x77   :  { %v120_v23 = vsel %vm119_vm0, %v114_v18, %v116_v22  ;;  %v72_v24 = vpop.permute.xlu2 %71 }
  0x78   :  { %259 = vmatpush.bf16.msra.mxu0 %v120_v23 }
  0x7c   :  { %224 = vrot.lane.b32.xlu1 %v789_v17, %s859_s16  ;;  %152 = vrot.lane.b32.xlu0 %v976_v15, %s858_s15 }
  0x7d   :  { %154 = vrot.lane.b32.xlu2 %v789_v17, %s858_s15 }
  0x7e   :  { %v107_v25 = vpop.permute.xlu1 %106  ;;  %v118_v26 = vpop.permute.xlu0 %117 }
  0x7f   :  { %v121_v27 = vsel %vm119_vm0, %v116_v22, %v118_v26  ;;  %v61_v28 = vpop.permute.xlu2 %60  ;;  %v110_v29 = vsel %vm108_vm1, %v105_v21, %v107_v25 }
  0x80   :  { %297 = vmatpush.bf16.msra.mxu2 %v121_v27 }
  0x84   :  { %298 = vmatpush.bf16.msra.mxu2 %v110_v29 }
  0x86   :  { %v103_v30 = vpop.permute.xlu1 %102  ;;  %v96_v31 = vpop.permute.xlu0 %95 }
  0x87   :  { %v109_v32 = vsel %vm108_vm1, %v103_v30, %v105_v21  ;;  %v99_v33 = vsel %vm97_vm2, %v94_v19, %v96_v31  ;;  %v50_v34 = vpop.permute.xlu2 %49 }
  0x88   :  { %260 = vmatpush.bf16.msra.mxu0 %v109_v32  ;;  %299 = vmatpush.bf16.msra.mxu2 %v99_v33 }
  0x8e   :  { %v92_v35 = vpop.permute.xlu1 %91  ;;  %v85_v36 = vpop.permute.xlu0 %84 }
  0x8f   :  { %v98_v37 = vsel %vm97_vm2, %v92_v35, %v94_v19  ;;  %v88_v38 = vsel %vm86_vm3, %v83_v20, %v85_v36  ;;  %v127_v39 = vpop.permute.xlu2 %126 }
  0x90   :  { %261 = vmatpush.bf16.msra.mxu0 %v98_v37  ;;  %300 = vmatpush.bf16.msra.mxu2 %v88_v38 }
  0x96   :  { %v81_v40 = vpop.permute.xlu1 %80  ;;  %v74_v41 = vpop.permute.xlu0 %73 }
  0x97   :  { %v87_v42 = vsel %vm86_vm3, %v81_v40, %v83_v20  ;;  %v77_v43 = vsel %vm75_vm4, %v72_v24, %v74_v41  ;;  %v125_v44 = vpop.permute.xlu2 %124 }
  0x98   :  { %262 = vmatpush.bf16.msra.mxu0 %v87_v42  ;;  %301 = vmatpush.bf16.msra.mxu2 %v77_v43  ;;  %v131_v45 = vsel %vm130_vm5, %v125_v44, %v127_v39 }
  0x99   :  { %285 = vmatpush.bf16.msra.mxu1 %v131_v45 }
  0x9c   :  { %806 = vmatmul.msk.bf16.vlgmr.msra.gmra.mxu1 %vm252_vm8, %v1040_v57 }
  0x9e   :  { %v70_v46 = vpop.permute.xlu1 %69  ;;  %v63_v47 = vpop.permute.xlu0 %62 }
  0x9f   :  { %v76_v48 = vsel %vm75_vm4, %v70_v46, %v72_v24  ;;  %v66_v49 = vsel %vm64_vm6, %v61_v28, %v63_v47  ;;  %v215_v51 = vpop.permute.xlu2 %214 }
  0xa0   :  { %263 = vmatpush.bf16.msra.mxu0 %v76_v48  ;;  %302 = vmatpush.bf16.msra.mxu2 %v66_v49 }
  0xa6   :  { %v59_v53 = vpop.permute.xlu1 %58  ;;  %v52_v54 = vpop.permute.xlu0 %51 }
  0xa7   :  { %v65_v55 = vsel %vm64_vm6, %v59_v53, %v61_v28  ;;  %v55_v56 = vsel %vm53_vm7, %v50_v34, %v52_v54  ;;  %v205_v1 = vpop.permute.xlu2 %204 }
  0xa8   :  { %264 = vmatpush.bf16.msra.mxu0 %v65_v55  ;;  %303 = vmatpush.bf16.msra.mxu2 %v55_v56 }
  0xac   :  { %304 = vmatpush.bf16.msra.mxu2 %v902_v2  ;;  %v830_v2 = vld [vmem:[%s1366_s1 + $0x14] sm:$0xf] }
  0xad   :  { %v1068_v9 = vor.u32 %v830_v2, %v802_v3  ;;  %v415_v3 = vld [vmem:[%s1367_s2 + $0x20] sm:$0xff] }
  0xae   :  { %v48_v61 = vpop.permute.xlu1 %47  ;;  %v129_v62 = vpop.permute.xlu0 %128 }
  0xaf   :  { %v54_v63 = vsel %vm53_vm7, %v48_v61, %v50_v34  ;;  %v132_v0 = vsel %vm130_vm5, %v127_v39, %v129_v62  ;;  %305 = vmatmul.bf16.vlgmr.msra.gmra.mxu2 %v1050_v60  ;;  %v195_v11 = vpop.permute.xlu2 %194  ;;  %807 = vmatmul.msk.bf16.gmra.mxu1 %vm252_vm8, %v1068_v9 }
  0xb0   :  { %265 = vmatpush.bf16.msra.mxu0 %v54_v63  ;;  %323 = vmatpush.bf16.msra.mxu3 %v132_v0 }
  0xb3   :  { %808 = vmatmul.msk.bf16.vlgmr.msra.gmra.mxu3 %vm252_vm8, %v1040_v57 }
  0xb4   :  { %266 = vmatpush.bf16.msra.mxu0 %v910_v5  ;;  %v800_v5 = vld [vmem:[%s1366_s1 + $0x10] sm:$0xf] }
  0xb5   :  { %v801_v12 = vor.u32 %v831_v10, %v800_v5 }
  0xb6   :  { %v213_v4 = vpop.permute.xlu1 %212  ;;  %v211_v6 = vpop.permute.xlu0 %210 }
  0xb7   :  { %v216_v7 = vsel %vm119_vm0, %v211_v6, %v213_v4  ;;  %v217_v8 = vsel %vm119_vm0, %v213_v4, %v215_v51  ;;  %267 = vmatmul.bf16.vlgmr.msra.gmra.mxu0 %v1050_v60  ;;  %v185_v19 = vpop.permute.xlu2 %184  ;;  %v416_v4 = vld [vmem:[%s1367_s2 + $0x28] sm:$0xff] }
  0xb8   :  { %335 = vmatpush.bf16.msrb.mxu1 %v216_v7  ;;  %373 = vmatpush.bf16.msrb.mxu0 %v217_v8 }
  0xbe   :  { %v203_v13 = vpop.permute.xlu1 %202  ;;  %v201_v14 = vpop.permute.xlu0 %200 }
  0xbf   :  { %v206_v17 = vsel %vm108_vm1, %v201_v14, %v203_v13  ;;  %v207_v18 = vsel %vm108_vm1, %v203_v13, %v205_v1  ;;  %310 = vmatmul.bf16.gmra.mxu2 %v801_v12  ;;  %v175_v24 = vpop.permute.xlu2 %174  ;;  %v419_v14 = vld [vmem:[%s1367_s2 + $0x40] sm:$0xff] }
  0xc0   :  { %336 = vmatpush.bf16.msrb.mxu1 %v206_v17  ;;  %374 = vmatpush.bf16.msrb.mxu0 %v207_v18 }
  0xc3   :  { %809 = vmatmul.msk.bf16.gmra.mxu3 %vm252_vm8, %v1068_v9 }
  0xc6   :  { %v193_v20 = vpop.permute.xlu1 %192  ;;  %v191_v21 = vpop.permute.xlu0 %190 }
  0xc7   :  { %v196_v22 = vsel %vm97_vm2, %v191_v21, %v193_v20  ;;  %v197_v23 = vsel %vm97_vm2, %v193_v20, %v195_v11  ;;  %272 = vmatmul.bf16.gmra.mxu0 %v801_v12  ;;  %v165_v33 = vpop.permute.xlu2 %164  ;;  %v417_v11 = vld [vmem:[%s1367_s2 + $0x30] sm:$0xff]  ;;  %v420_v20 = vld [vmem:[%s1367_s2 + $0x48] sm:$0xff] }
  0xc8   :  { %337 = vmatpush.bf16.msrb.mxu1 %v196_v22  ;;  %375 = vmatpush.bf16.msrb.mxu0 %v197_v23  ;;  %v418_v22 = vld [vmem:[%s1367_s2 + $0x38] sm:$0xff] }
  0xce   :  { %v183_v25 = vpop.permute.xlu1 %182  ;;  %v181_v26 = vpop.permute.xlu0 %180 }
  0xcf   :  { %v186_v27 = vsel %vm86_vm3, %v181_v26, %v183_v25  ;;  %v187_v28 = vsel %vm86_vm3, %v183_v25, %v185_v19  ;;  %v151_v38 = vpop.permute.xlu2 %150 }
  0xd0   :  { %338 = vmatpush.bf16.msrb.mxu1 %v186_v27  ;;  %376 = vmatpush.bf16.msrb.mxu0 %v187_v28 }
  0xd6   :  { %v173_v29 = vpop.permute.xlu1 %172  ;;  %v171_v30 = vpop.permute.xlu0 %170 }
  0xd7   :  { %v176_v31 = vsel %vm75_vm4, %v171_v30, %v173_v29  ;;  %v177_v32 = vsel %vm75_vm4, %v173_v29, %v175_v24  ;;  %v155_v42 = vpop.permute.xlu2 %154 }
  0xd8   :  { %339 = vmatpush.bf16.msrb.mxu1 %v176_v31  ;;  %377 = vmatpush.bf16.msrb.mxu0 %v177_v32 }
  0xde   :  { %v163_v34 = vpop.permute.xlu1 %162  ;;  %v161_v35 = vpop.permute.xlu0 %160 }
  0xdf   :  { %v166_v36 = vsel %vm64_vm6, %v161_v35, %v163_v34  ;;  %v167_v37 = vsel %vm64_vm6, %v163_v34, %v165_v33  ;;  %v411_v35 = vld [vmem:[%s1367_s2] sm:$0xff] }
  0xe0   :  { %340 = vmatpush.bf16.msrb.mxu1 %v166_v36  ;;  %378 = vmatpush.bf16.msrb.mxu0 %v167_v37  ;;  %v412_v36 = vld [vmem:[%s1367_s2 + $0x8] sm:$0xff] }
  0xe6   :  { %v223_v39 = vpop.permute.xlu1 %222  ;;  %v221_v40 = vpop.permute.xlu0 %220 }
  0xe7   :  { %v226_v41 = vsel %vm130_vm5, %v221_v40, %v223_v39 }
  0xe8   :  { %361 = vmatpush.bf16.msrb.mxu3 %v226_v41  ;;  %v421_v41 = vld [vmem:[%s1367_s2 + $0x50] sm:$0xff] }
  0xeb   :  { %810 = vmatmul.msk.bf16.vlgmr.msrb.gmra.mxu3 %vm252_vm8, %v1040_v57 }
  0xee   :  { %v225_v43 = vpop.permute.xlu1 %224  ;;  %v153_v44 = vpop.permute.xlu0 %152 }
  0xef   :  { %v156_v45 = vsel %vm53_vm7, %v151_v38, %v153_v44  ;;  %v227_v46 = vsel %vm130_vm5, %v223_v39, %v225_v43  ;;  %v157_v47 = vsel %vm53_vm7, %v153_v44, %v155_v42  ;;  %v423_v43 = vld [vmem:[%s1367_s2 + $0x60] sm:$0xff]  ;;  %v424_v44 = vld [vmem:[%s1367_s2 + $0x68] sm:$0xff] }
  0xf0   :  { %341 = vmatpush.bf16.msrb.mxu1 %v156_v45  ;;  %399 = vmatpush.bf16.msrb.mxu2 %v227_v46 }
  0xf1   :  { %379 = vmatpush.bf16.msrb.mxu0 %v157_v47 }
  0xf3   :  { %812 = vmatmul.msk.bf16.vlgmr.msrb.gmra.mxu2 %vm252_vm8, %v1040_v57 }
  0xf4   :  { %342 = vmatpush.bf16.msrb.mxu1 %v978_v16 }
  0xf5   :  { %380 = vmatpush.bf16.msrb.mxu0 %v976_v15 }
  0xf7   :  { %343 = vmatmul.bf16.vlgmr.msrb.gmra.mxu1 %v1050_v60 }
  0xf8   :  { %381 = vmatmul.bf16.vlgmr.msrb.gmra.mxu0 %v1050_v60 }
  0xfb   :  { %811 = vmatmul.msk.bf16.gmra.mxu3 %vm252_vm8, %v1068_v9 }
 0x103   :  { %813 = vmatmul.msk.bf16.gmra.mxu2 %vm252_vm8, %v1068_v9 }
 0x107   :  { %348 = vmatmul.bf16.gmra.mxu1 %v801_v12 }
 0x108   :  { %386 = vmatmul.bf16.gmra.mxu0 %v801_v12 }
 0x119   :  { %v287_v49 = vpop.f32.mrf.mxu1 }
 0x121   :  { %v289_v16 = vpop.f32.mrf.mxu1 }
 0x12c   :  { %v292_v55 = vpop.f32.mrf.mxu1 }
 0x132   :  { %v306_v51 = vpop.f32.mrf.mxu2 }
 0x134   :  { %v268_v50 = vpop.f32.mrf.mxu0  ;;  %v294_v59 = vpop.f32.mrf.mxu1 }
 0x135   :  { %v1160_v31 = vadd.f32 %v287_v49, %v268_v50  ;;  %v413_v49 = vld [vmem:[%s1367_s2 + $0x10] sm:$0xff] }
 0x136   :  { %v325_v48 = vpop.f32.mrf.mxu3 }
 0x137   :  { %v1162_v32 = vadd.f32 %v325_v48, %v306_v51  ;;  %v422_v51 = vld [vmem:[%s1367_s2 + $0x58] sm:$0xff] }
 0x13a   :  { %v308_v15 = vpop.f32.mrf.mxu2 }
 0x13c   :  { %v270_v53 = vpop.f32.mrf.mxu0 }
 0x13d   :  { %v1106_v0 = vadd.f32 %v289_v16, %v270_v53  ;;  %v428_v16 = vmul.f32 %v412_v36, %v1162_v32 }
 0x13e   :  { %v327_v52 = vpop.f32.mrf.mxu3 }
 0x13f   :  { %v1108_v1 = vadd.f32 %v327_v52, %v308_v15  ;;  %v1117_v8 = vmul.f32 %v415_v3, %v1106_v0  ;;  %v427_v52 = vmul.f32 %v411_v35, %v1160_v31 }
 0x141   :  { %v1120_v9 = vmul.f32 %v416_v4, %v1108_v1  ;;  %v467_v12 = vmul.f32 %v1117_v8, %v1106_v0 }
 0x142   :  { %v311_v57 = vpop.f32.mrf.mxu2 }
 0x143   :  { %v468_v13 = vmul.f32 %v1120_v9, %v1108_v1 }
 0x144   :  { %v273_v56 = vpop.f32.mrf.mxu0 }
 0x145   :  { %v1122_v5 = vadd.f32 %v292_v55, %v273_v56  ;;  %v484_v29 = vadd.f32 %v468_v13, %v467_v12  ;;  %v425_v12 = vld [vmem:[%s1367_s2 + $0x70] sm:$0xff] }
 0x146   :  { %v330_v54 = vpop.f32.mrf.mxu3 }
 0x147   :  { %v1134_v17 = vadd.f32 %v330_v54, %v311_v57  ;;  %v1150_v25 = vmul.f32 %v419_v14, %v1122_v5 }
 0x149   :  { %v1153_v26 = vmul.f32 %v420_v20, %v1134_v17  ;;  %v471_v37 = vmul.f32 %v1150_v25, %v1122_v5 }
 0x14a   :  { %v313_v61 = vpop.f32.mrf.mxu2 }
 0x14b   :  { %v472_v42 = vmul.f32 %v1153_v26, %v1134_v17 }
 0x14c   :  { %v275_v60 = vpop.f32.mrf.mxu0 }
 0x14d   :  { %v1174_v38 = vadd.f32 %v294_v59, %v275_v60 }
 0x14e   :  { %v332_v58 = vpop.f32.mrf.mxu3 }
 0x14f   :  { %v1176_v39 = vadd.f32 %v332_v58, %v313_v61  ;;  %v439_v54 = vmul.f32 %v423_v43, %v1174_v38  ;;  %v414_v58 = vld [vmem:[%s1367_s2 + $0x18] sm:$0xff]  ;;  %v489_v61 = vadd.f32 %v472_v42, %v471_v37 }
 0x151   :  { %v440_v55 = vmul.f32 %v424_v44, %v1176_v39 }
 0x16e   :  { %v363_v62 = vpop.f32.mrf.mxu3 }
 0x174   :  { %v344_v63 = vpop.f32.mrf.mxu1 }
 0x175   :  { %v382_v2 = vpop.f32.mrf.mxu0  ;;  %v1189_v45 = vadd.f32 %v363_v62, %v344_v63  ;;  %v463_v62 = vmul.f32 %v427_v52, %v1160_v31  ;;  %v464_v63 = vmul.f32 %v428_v16, %v1162_v32 }
 0x176   :  { %v401_v6 = vpop.f32.mrf.mxu2  ;;  %v365_v7 = vpop.f32.mrf.mxu3 }
 0x177   :  { %v1206_v56 = vadd.f32 %v401_v6, %v382_v2  ;;  %v429_v57 = vmul.f32 %v413_v49, %v1189_v45  ;;  %v475_v2 = vmul.f32 %v439_v54, %v1174_v38  ;;  %v476_v6 = vmul.f32 %v440_v55, %v1176_v39 }
 0x178   :  { %v448_v49 = vadd.f32 %v1120_v9, %v1117_v8 }
 0x179   :  { %v465_v13 = vmul.f32 %v429_v57, %v1189_v45  ;;  %v494_v35 = vadd.f32 %v476_v6, %v475_v2 }
 0x17c   :  { %v346_v10 = vpop.f32.mrf.mxu1 }
 0x17d   :  { %v1136_v18 = vadd.f32 %v365_v7, %v346_v10  ;;  %v384_v19 = vpop.f32.mrf.mxu0  ;;  %v430_v7 = vmul.f32 %v414_v58, %v1206_v56 }
 0x17e   :  { %v403_v21 = vpop.f32.mrf.mxu2  ;;  %v368_v30 = vpop.f32.mrf.mxu3 }
 0x17f   :  { %v1145_v23 = vmul.f32 %v417_v11, %v1136_v18  ;;  %v1147_v24 = vadd.f32 %v403_v21, %v384_v19 }
 0x181   :  { %v469_v27 = vmul.f32 %v1145_v23, %v1136_v18  ;;  %v1158_v28 = vmul.f32 %v418_v22, %v1147_v24  ;;  %v426_v22 = vld [vmem:[%s1367_s2 + $0x78] sm:$0xff] }
 0x183   :  { %v470_v33 = vmul.f32 %v1158_v28, %v1147_v24  ;;  %v485_v34 = vadd.f32 %v484_v29, %v469_v27 }
 0x184   :  { %v349_v40 = vpop.f32.mrf.mxu1 }
 0x185   :  { %v1191_v46 = vadd.f32 %v368_v30, %v349_v40  ;;  %v387_v47 = vpop.f32.mrf.mxu0  ;;  %v486_v48 = vadd.f32 %v485_v34, %v470_v33  ;;  %v458_v30 = vadd.f32 %v440_v55, %v439_v54  ;;  %v479_v33 = vadd.f32 %v464_v63, %v463_v62 }
 0x186   :  { %v406_v50 = vpop.f32.mrf.mxu2  ;;  %v370_v11 = vpop.f32.mrf.mxu3  ;;  %v466_v34 = vmul.f32 %v430_v7, %v1206_v56 }
 0x187   :  { %v437_v53 = vmul.f32 %v421_v41, %v1191_v46  ;;  %v1202_v15 = vadd.f32 %v406_v50, %v387_v47  ;;  %487 = vadd.xlane.f32.xlu2 %v486_v48  ;;  %v480_v41 = vadd.f32 %v479_v33, %v465_v13  ;;  %v449_v50 = vadd.f32 %v448_v49, %v1145_v23  ;;  %v499_v23 = vld [vmem:[%s1368_s5] sm:$0xff] }
 0x189   :  { %v473_v59 = vmul.f32 %v437_v53, %v1191_v46  ;;  %v438_v60 = vmul.f32 %v422_v51, %v1202_v15  ;;  %v481_v47 = vadd.f32 %v480_v41, %v466_v34  ;;  %v453_v51 = vadd.f32 %v1153_v26, %v1150_v25 }
 0x18a   :  { %v450_v55 = vadd.f32 %v449_v50, %v1158_v28 }
 0x18b   :  { %v474_v3 = vmul.f32 %v438_v60, %v1202_v15  ;;  %v490_v4 = vadd.f32 %v489_v61, %v473_v59  ;;  %v454_v54 = vadd.f32 %v453_v51, %v437_v53  ;;  %v443_v59 = vadd.f32 %v428_v16, %v427_v52  ;;  %v500_v52 = vld [vmem:[%s1368_s5 + $0x8] sm:$0xff]  ;;  %v501_v53 = vld [vmem:[%s1368_s5 + $0x10] sm:$0xff] }
 0x18c   :  { %v351_v10 = vpop.f32.mrf.mxu1 }
 0x18d   :  { %v1224_v14 = vadd.f32 %v370_v11, %v351_v10  ;;  %v491_v19 = vadd.f32 %v490_v4, %v474_v3  ;;  %v389_v20 = vpop.f32.mrf.mxu0  ;;  %v455_v58 = vadd.f32 %v454_v54, %v438_v60  ;;  %v444_v61 = vadd.f32 %v443_v59, %v429_v57  ;;  %v502_v57 = vld [vmem:[%s1368_s5 + $0x18] sm:$0xff] }
 0x18e   :  { %v408_v21 = vpop.f32.mrf.mxu2  ;;  %v860_v4 = vmov 0  }
 0x18f   :  { %v441_v27 = vmul.f32 %v425_v12, %v1224_v14  ;;  %v1230_v29 = vadd.f32 %v408_v21, %v389_v20  ;;  %492 = vadd.xlane.f32.xlu1 %v491_v19  ;;  %v445_v62 = vadd.f32 %v444_v61, %v430_v7  ;;  %842 = vset.pattern.permute.xlu2 %v860_v4 }
 0x190   :  { %841 = vset.pattern.permute.xlu1 %v860_v4  ;;  %843 = vset.pattern.permute.xlu0 %v860_v4 }
 0x191   :  { %v477_v36 = vmul.f32 %v441_v27, %v1224_v14  ;;  %v442_v37 = vmul.f32 %v426_v22, %v1230_v29  ;;  %v459_v40 = vadd.f32 %v458_v30, %v441_v27 }
 0x193   :  { %v460_v42 = vadd.f32 %v459_v40, %v442_v37  ;;  %v478_v43 = vmul.f32 %v442_v37, %v1230_v29  ;;  %v495_v44 = vadd.f32 %v494_v35, %v477_v36 }
 0x195   :  { %461 = vadd.xlane.f32.xlu2 %v460_v42  ;;  %v496_v48 = vadd.f32 %v495_v44, %v478_v43 }
 0x197   :  { %482 = vadd.xlane.f32.xlu1 %v481_v47  ;;  %497 = vadd.xlane.f32.xlu0 %v496_v48 }
 0x19d   :  { %451 = vadd.xlane.f32.xlu2 %v450_v55 }
 0x19f   :  { %456 = vadd.xlane.f32.xlu0 %v455_v58 }
 0x1a7   :  { %446 = vadd.xlane.f32.xlu0 %v445_v62 }
 0x1fa   :  { %v488_v63 = vpop.xlane.xlu2 %487 }
 0x202   :  { %v493_v3 = vpop.xlane.xlu1 %492 }
 0x208   :  { %v462_v8 = vpop.xlane.xlu2 %461 }
 0x209   :  { %528 = vmatpush.msra.mxu1 %v462_v8 }
 0x20a   :  { %v498_v9 = vpop.xlane.xlu0 %497  ;;  %v483_v25 = vpop.xlane.xlu1 %482 }
 0x20b   :  { %557 = vmatpush.msra.mxu3 %v498_v9 }
 0x20d   :  { %558 = vmatpush.msra.mxu3 %v493_v3  ;;  %v638_v3 = vld [vmem:[%s1369_s3] sm:$0xff] }
 0x20f   :  { %559 = vmatpush.msra.mxu3 %v488_v63 }
 0x210   :  { %v452_v28 = vpop.xlane.xlu2 %451 }
 0x211   :  { %560 = vmatpush.msra.mxu3 %v483_v25 }
 0x212   :  { %v457_v26 = vpop.xlane.xlu0 %456  ;;  %818 = vmatmul.msk.f32.vlgmr.msra.gmra.mxu3 %vm503_vm9, %v499_v23 }
 0x213   :  { %529 = vmatpush.msra.mxu1 %v457_v26 }
 0x215   :  { %530 = vmatpush.msra.mxu1 %v452_v28 }
 0x21a   :  { %v447_v16 = vpop.xlane.xlu0 %446  ;;  %819 = vmatmul.msk.f32.gmra.mxu3 %vm503_vm9, %v500_v52 }
 0x21b   :  { %531 = vmatpush.msra.mxu1 %v447_v16 }
 0x21c   :  { %814 = vmatmul.msk.f32.vlgmr.msra.gmra.mxu1 %vm503_vm9, %v499_v23 }
 0x222   :  { %820 = vmatmul.msk.f32.gmra.mxu3 %vm503_vm9, %v501_v53 }
 0x224   :  { %815 = vmatmul.msk.f32.gmra.mxu1 %vm503_vm9, %v500_v52 }
 0x22a   :  { %821 = vmatmul.msk.f32.gmra.mxu3 %vm503_vm9, %v502_v57 }
 0x22c   :  { %816 = vmatmul.msk.f32.gmra.mxu1 %vm503_vm9, %v501_v53 }
 0x234   :  { %817 = vmatmul.msk.f32.gmra.mxu1 %vm503_vm9, %v502_v57 }
 0x295   :  { %v562_v60 = vpop.f32.mrf.mxu3 }
 0x296   :  { %v578_v7 = vmul.f32 0.0005952381, %v562_v60 }
 0x299   :  { %v533_v2 = vpop.f32.mrf.mxu1 }
 0x29a   :  { %v1262_v6 = vmul.f32 0.0005952381, %v533_v2  ;;  %v639_v2 = vld [vmem:[%s1369_s3 + $0x8] sm:$0xff] }
 0x29c   :  { %v582_v10 = vmul.f32 %v1262_v6, %v1262_v6 }
 0x29d   :  { %v565_v11 = vpop.f32.mrf.mxu3 }
 0x29e   :  { %v586_v12 = vsub.f32 %v578_v7, %v582_v10  ;;  %v579_v22 = vmul.f32 0.0005952381, %v565_v11 }
 0x2a0   :  { %v590_v13 = vmax.f32 %v586_v12, 0.0 }
 0x2a1   :  { %v536_v19 = vpop.f32.mrf.mxu1 }
 0x2a2   :  { %v594_v20 = vadd.f32 1e-05, %v590_v13  ;;  %v575_v21 = vmul.f32 0.0005952381, %v536_v19  ;;  %v647_v13 = vld [vmem:[%s1370_s4 + $0x8] sm:$0xff] }
 0x2a4   :  { %844 = vrsqrt.f32 %v594_v20  ;;  %v583_v27 = vmul.f32 %v575_v21, %v575_v21  ;;  %vm604_vm11 = vweird.f32 %v594_v20 }
 0x2a5   :  { %v568_v30 = vpop.f32.mrf.mxu3 }
 0x2a6   :  { %v587_v33 = vsub.f32 %v579_v22, %v583_v27  ;;  %v580_v41 = vmul.f32 0.0005952381, %v568_v30 }
 0x2a8   :  { %v591_v34 = vmax.f32 %v587_v33, 0.0 }
 0x2a9   :  { %v539_v35 = vpop.f32.mrf.mxu1 }
 0x2aa   :  { %v845_v36 = vpop.eup %844  ;;  %v595_v37 = vadd.f32 1e-05, %v591_v34  ;;  %v1266_v40 = vmul.f32 0.0005952381, %v539_v35  ;;  %v646_v34 = vld [vmem:[%s1370_s4] sm:$0xff] }
 0x2ab   :  { %v599_v42 = vmul.f32 %v845_v36, %v594_v20  ;;  %vm605_vm10 = vweird.f32 %v845_v36 }
 0x2ac   :  { %846 = vrsqrt.f32 %v595_v37  ;;  %v584_v43 = vmul.f32 %v1266_v40, %v1266_v40  ;;  %vm606_vm12 = vmor %vm604_vm11, %vm605_vm10  ;;  %vm614_vm14 = vweird.f32 %v595_v37 }
 0x2ad   :  { %v600_v44 = vmul.f32 %v845_v36, %v599_v42  ;;  %v571_v49 = vpop.f32.mrf.mxu3 }
 0x2ae   :  { %v588_v47 = vsub.f32 %v580_v41, %v584_v43  ;;  %v581_v61 = vmul.f32 0.0005952381, %v571_v49  ;;  %v641_v49 = vld [vmem:[%s1369_s3 + $0x18] sm:$0xff] }
 0x2af   :  { %v601_v48 = vmul.f32 0.5, %v600_v44 }
 0x2b0   :  { %v592_v50 = vmax.f32 %v588_v47, 0.0  ;;  %v648_v47 = vld [vmem:[%s1370_s4 + $0x10] sm:$0xff] }
 0x2b1   :  { %v602_v51 = vsub.f32 1.5, %v601_v48  ;;  %v542_v54 = vpop.f32.mrf.mxu1 }
 0x2b2   :  { %v847_v55 = vpop.eup %846  ;;  %v596_v58 = vadd.f32 1e-05, %v592_v50  ;;  %v1270_v59 = vmul.f32 0.0005952381, %v542_v54 }
 0x2b3   :  { %v609_v62 = vmul.f32 %v847_v55, %v595_v37  ;;  %v603_v63 = vmul.f32 %v845_v36, %v602_v51  ;;  %vm615_vm13 = vweird.f32 %v847_v55 }
 0x2b4   :  { %848 = vrsqrt.f32 %v596_v58  ;;  %v585_v8 = vmul.f32 %v1270_v59, %v1270_v59  ;;  %vm616_vm15 = vmor %vm614_vm14, %vm615_vm13  ;;  %vm624_vm1 = vweird.f32 %v596_v58 }
 0x2b5   :  { %v610_v9 = vmul.f32 %v847_v55, %v609_v62  ;;  %v607_v23 = vsel %vm606_vm12, %v845_v36, %v603_v63  ;;  %v640_v36 = vld [vmem:[%s1369_s3 + $0x10] sm:$0xff] }
 0x2b6   :  { %v589_v25 = vsub.f32 %v581_v61, %v585_v8  ;;  %v642_v26 = vmul.f32 %v638_v3, %v607_v23 }
 0x2b7   :  { %v611_v28 = vmul.f32 0.5, %v610_v9 }
 0x2b8   :  { %v593_v52 = vmax.f32 %v589_v25, 0.0  ;;  %660 = vperm.xlu1 %841, %v642_v26   ;;  %v650_v30 = vmul.f32 %v642_v26, %v1262_v6 }
 0x2b9   :  { %v612_v16 = vsub.f32 1.5, %v611_v28 }
 0x2ba   :  { %v849_v53 = vpop.eup %848  ;;  %v597_v57 = vadd.f32 1e-05, %v593_v52  ;;  %v654_v41 = vsub.f32 %v646_v34, %v650_v30 }
 0x2bb   :  { %v619_v60 = vmul.f32 %v849_v53, %v596_v58  ;;  %v613_v4 = vmul.f32 %v847_v55, %v612_v16  ;;  %vm625_vm0 = vweird.f32 %v849_v53 }
 0x2bc   :  { %850 = vrsqrt.f32 %v597_v57  ;;  %vm626_vm2 = vmor %vm624_vm1, %vm625_vm0  ;;  %vm634_vm4 = vweird.f32 %v597_v57 }
 0x2bd   :  { %v620_v7 = vmul.f32 %v849_v53, %v619_v60  ;;  %v617_v10 = vsel %vm616_vm15, %v847_v55, %v613_v4 }
 0x2be   :  { %v643_v11 = vmul.f32 %v639_v2, %v617_v10 }
 0x2bf   :  { %v621_v12 = vmul.f32 0.5, %v620_v7 }
 0x2c0   :  { %665 = vperm.xlu2 %842, %v643_v11   ;;  %v651_v19 = vmul.f32 %v643_v11, %v575_v21 }
 0x2c1   :  { %v622_v20 = vsub.f32 1.5, %v621_v12 }
 0x2c2   :  { %v851_v22 = vpop.eup %850  ;;  %v655_v27 = vsub.f32 %v647_v13, %v651_v19 }
 0x2c3   :  { %v629_v33 = vmul.f32 %v851_v22, %v597_v57  ;;  %v623_v35 = vmul.f32 %v849_v53, %v622_v20  ;;  %vm635_vm3 = vweird.f32 %v851_v22 }
 0x2c4   :  { %701 = vperm.xlu1 %841, %v655_v27   ;;  %vm636_vm5 = vmor %vm634_vm4, %vm635_vm3 }
 0x2c5   :  { %v630_v21 = vmul.f32 %v851_v22, %v629_v33  ;;  %v627_v37 = vsel %vm626_vm2, %v849_v53, %v623_v35 }
 0x2c6   :  { %v644_v42 = vmul.f32 %v640_v36, %v627_v37 }
 0x2c7   :  { %v631_v43 = vmul.f32 0.5, %v630_v21 }
 0x2c8   :  { %696 = vperm.xlu2 %842, %v654_v41   ;;  %670 = vperm.xlu0 %843, %v644_v42   ;;  %v652_v44 = vmul.f32 %v644_v42, %v1266_v40  ;;  %v649_v40 = vld [vmem:[%s1370_s4 + $0x18] sm:$0xff] }
 0x2c9   :  { %v632_v6 = vsub.f32 1.5, %v631_v43 }
 0x2ca   :  { %v656_v51 = vsub.f32 %v648_v47, %v652_v44 }
 0x2cb   :  { %v633_v48 = vmul.f32 %v851_v22, %v632_v6 }
 0x2cd   :  { %v637_v50 = vsel %vm636_vm5, %v851_v22, %v633_v48 }
 0x2ce   :  { %v645_v54 = vmul.f32 %v641_v49, %v637_v50 }
 0x2d0   :  { %706 = vperm.xlu2 %842, %v656_v51   ;;  %675 = vperm.xlu1 %841, %v645_v54   ;;  %v653_v55 = vmul.f32 %v645_v54, %v1270_v59 }
 0x2d2   :  { %v657_v58 = vsub.f32 %v649_v40, %v653_v55 }
 0x2d8   :  { %711 = vperm.xlu1 %841, %v657_v58  }
 0x31a   :  { %v666_v61 = vpop.permute.xlu2 %665 }
 0x322   :  { %v697_v23 = vpop.permute.xlu2 %696 }
 0x32a   :  { %v661_v62 = vpop.permute.xlu1 %660  ;;  %v707_v22 = vpop.permute.xlu2 %706 }
 0x32b   :  { %v678_v63 = vmul.f32 %v661_v62, %v1160_v31  ;;  %v679_v3 = vmul.f32 %v661_v62, %v1162_v32  ;;  %v680_v8 = vmul.f32 %v661_v62, %v1189_v45  ;;  %v681_v9 = vmul.f32 %v661_v62, %v1206_v56 }
 0x32c   :  { %v682_v31 = vmul.f32 %v666_v61, %v1106_v0  ;;  %v683_v32 = vmul.f32 %v666_v61, %v1108_v1  ;;  %v684_v45 = vmul.f32 %v666_v61, %v1136_v18  ;;  %v685_v56 = vmul.f32 %v666_v61, %v1147_v24 }
 0x32d   :  { %v714_v25 = vadd.f32 %v697_v23, %v678_v63  ;;  %v715_v26 = vadd.f32 %v697_v23, %v679_v3  ;;  %v716_v59 = vadd.f32 %v697_v23, %v680_v8  ;;  %v717_v28 = vadd.f32 %v697_v23, %v681_v9 }
 0x32f   :  { %v730_v52 = vmax.f32 %v714_v25, 0.0  ;;  %v731_v16 = vmax.f32 %v715_v26, 0.0  ;;  %v732_v53 = vmax.f32 %v716_v59, 0.0  ;;  %v733_v57 = vmax.f32 %v717_v28, 0.0 }
 0x331   :  { %746 = vst [vmem:[%s1371_s6] sm:$0xff] %v730_v52 }
 0x332   :  { %747 = vst [vmem:[%s1371_s6 + $0x8] sm:$0xff] %v731_v16 }
 0x333   :  { %748 = vst [vmem:[%s1371_s6 + $0x10] sm:$0xff] %v732_v53 }
 0x334   :  { %749 = vst [vmem:[%s1371_s6 + $0x18] sm:$0xff] %v733_v57 }
 0x336   :  { %v702_v60 = vpop.permute.xlu1 %701 }
 0x337   :  { %v718_v4 = vadd.f32 %v702_v60, %v682_v31  ;;  %v719_v2 = vadd.f32 %v702_v60, %v683_v32  ;;  %v720_v7 = vadd.f32 %v702_v60, %v684_v45  ;;  %v721_v10 = vadd.f32 %v702_v60, %v685_v56 }
 0x339   :  { %v734_v11 = vmax.f32 %v718_v4, 0.0  ;;  %v735_v12 = vmax.f32 %v719_v2, 0.0  ;;  %v736_v13 = vmax.f32 %v720_v7, 0.0  ;;  %v737_v19 = vmax.f32 %v721_v10, 0.0 }
 0x33a   :  { %v671_v20 = vpop.permute.xlu0 %670 }
 0x33b   :  { %750 = vst [vmem:[%s1371_s6 + $0x20] sm:$0xff] %v734_v11  ;;  %v686_v0 = vmul.f32 %v671_v20, %v1122_v5  ;;  %v687_v1 = vmul.f32 %v671_v20, %v1134_v17  ;;  %v688_v18 = vmul.f32 %v671_v20, %v1191_v46  ;;  %v689_v24 = vmul.f32 %v671_v20, %v1202_v15 }
 0x33c   :  { %751 = vst [vmem:[%s1371_s6 + $0x28] sm:$0xff] %v735_v12 }
 0x33d   :  { %752 = vst [vmem:[%s1371_s6 + $0x30] sm:$0xff] %v736_v13  ;;  %v722_v27 = vadd.f32 %v707_v22, %v686_v0  ;;  %v723_v30 = vadd.f32 %v707_v22, %v687_v1  ;;  %v724_v33 = vadd.f32 %v707_v22, %v688_v18  ;;  %v725_v34 = vadd.f32 %v707_v22, %v689_v24 }
 0x33e   :  { %753 = vst [vmem:[%s1371_s6 + $0x38] sm:$0xff] %v737_v19 }
 0x33f   :  { %v738_v5 = vmax.f32 %v722_v27, 0.0  ;;  %v739_v17 = vmax.f32 %v723_v30, 0.0  ;;  %v740_v46 = vmax.f32 %v724_v33, 0.0  ;;  %v741_v15 = vmax.f32 %v725_v34, 0.0 }
 0x341   :  { %754 = vst [vmem:[%s1371_s6 + $0x40] sm:$0xff] %v738_v5 }
 0x342   :  { %755 = vst [vmem:[%s1371_s6 + $0x48] sm:$0xff] %v739_v17  ;;  %v676_v35 = vpop.permute.xlu1 %675 }
 0x343   :  { %756 = vst [vmem:[%s1371_s6 + $0x50] sm:$0xff] %v740_v46  ;;  %v690_v36 = vmul.f32 %v676_v35, %v1174_v38  ;;  %v691_v21 = vmul.f32 %v676_v35, %v1176_v39  ;;  %v692_v37 = vmul.f32 %v676_v35, %v1224_v14  ;;  %v693_v41 = vmul.f32 %v676_v35, %v1230_v29 }
 0x344   :  { %757 = vst [vmem:[%s1371_s6 + $0x58] sm:$0xff] %v741_v15 }
 0x34a   :  { %v712_v42 = vpop.permute.xlu1 %711 }
 0x34b   :  { %v726_v43 = vadd.f32 %v712_v42, %v690_v36  ;;  %v727_v6 = vadd.f32 %v712_v42, %v691_v21  ;;  %v728_v44 = vadd.f32 %v712_v42, %v692_v37  ;;  %v729_v47 = vadd.f32 %v712_v42, %v693_v41 }
 0x34d   :  { %v742_v48 = vmax.f32 %v726_v43, 0.0  ;;  %v743_v49 = vmax.f32 %v727_v6, 0.0  ;;  %v744_v50 = vmax.f32 %v728_v44, 0.0  ;;  %v745_v51 = vmax.f32 %v729_v47, 0.0 }
 0x34f   :  { %758 = vst [vmem:[%s1371_s6 + $0x60] sm:$0xff] %v742_v48 }
 0x350   :  { %759 = vst [vmem:[%s1371_s6 + $0x68] sm:$0xff] %v743_v49 }
 0x351   :  { %760 = vst [vmem:[%s1371_s6 + $0x70] sm:$0xff] %v744_v50 }
 0x352   :  { %761 = vst [vmem:[%s1371_s6 + $0x78] sm:$0xff] %v745_v51 }

</bundles_post_ra>
